<compile_context>
chip_gen: v6e
topology: v6e:2x2x1
jax: 0.10.0
libtpu: 0.0.40
codegen_flags: <defaults>
</compile_context>

<pallas_src>
import functools

import jax
import jax.numpy as jnp
from jax.experimental import pallas as pl
from jax.experimental.pallas import tpu as pltpu


# ---------------------------------------------------------------------------
# Kernel: full T-step rollout in one invocation
# ---------------------------------------------------------------------------
def _pi_agent_kernel(
    # inputs (all fully VMEM resident)
    x_ref,                      # (T*B, in_dim)     flattened observations
    h0_ref,                     # (B, 2H)           [h_q | h_pi]
    w1_ref, b1_ref,             # fc1
    wih_ref, bih_ref,           # (H, 6H), (1, 6H)  gate-repacked [rq|rp|zq|zp|nq|np]
    whh_ref, bhh_ref,           # (2H, 6H), (1,6H)  block-diagonal, same gate order
    wep_ref, bep_ref,           # (2H, OUT_PAD), (1, OUT_PAD)  [pi | q | 0-pad]
    # outputs
    qpi_ref,                    # (T*B, OUT_PAD)    lane-dense [pi | q | 0-pad]
    hfin_ref,                   # (B, 2H)           final [h_q | h_pi]
    # scratch
    gi_sc,                      # (T*B, 6H)
    hs_sc,                      # (T*B, 2H)
    *, seq_len, batch, hidden_dim, n_agents, n_actions,
):
  H = hidden_dim
  H2 = 2 * H
  H4 = 4 * H
  A = n_actions
  GA = n_agents * A
  T = seq_len
  B = batch

  # ---- prologue: input projections batched over all T*B rows --------------
  xr = jnp.maximum(
      jnp.dot(x_ref[...], w1_ref[...], preferred_element_type=jnp.float32)
      + b1_ref[...],
      0.0,
  )                                                           # (T*B, H)
  gi_sc[...] = (
      jnp.dot(xr, wih_ref[...], preferred_element_type=jnp.float32)
      + bih_ref[...])                                         # (T*B, 6H)

  # ---- serial recurrence: both GRU cells fused via block-diag whh ---------
  # Statically unrolled (T is small).  TODO(synk): switch to lax.fori_loop
  # with dynamic pl.ds indexing for large T.
  h = h0_ref[...]                                             # (B, 2H)
  for t in range(T):
    gi = gi_sc[pl.ds(t * B, B), :]                            # (B, 6H)
    gh = (jnp.dot(h, whh_ref[...], preferred_element_type=jnp.float32)
          + bhh_ref[...])                                     # (B, 6H)
    rz = jax.nn.sigmoid(gi[:, :H4] + gh[:, :H4])              # [r_q|r_p|z_q|z_p]
    r = rz[:, :H2]
    z = rz[:, H2:H4]
    n = jnp.tanh(gi[:, H4:] + r * gh[:, H4:])                 # [n_q|n_p]
    h = (1.0 - z) * n + z * h
    hs_sc[pl.ds(t * B, B), :] = h
  hfin_ref[...] = h

  # ---- epilogue: fc_pi + fc_q + segmented softmax, batched over T*B -------
  po = (jnp.dot(hs_sc[...], wep_ref[...], preferred_element_type=jnp.float32)
        + bep_ref[...])                                       # (T*B, OUT_PAD)
  # lane-dense full-width store: q columns and zero padding are final,
  # pi columns hold raw logits and are overwritten below.
  qpi_ref[...] = po
  # exact per-segment softmax over groups of n_actions (runs once per call)
  for g in range(n_agents):
    lg = po[:, g * A:(g + 1) * A]                             # (T*B, A)
    m = jnp.max(lg, axis=-1, keepdims=True)
    e = jnp.exp(lg - m)
    qpi_ref[:, pl.ds(g * A, A)] = e / jnp.sum(e, axis=-1, keepdims=True)


# ---------------------------------------------------------------------------
# Wrappers
# ---------------------------------------------------------------------------
def pi_agent_rollout(x_seq, h0_q, h0_pi, params,
                     *, hidden_dim, n_agents, n_actions):
  """Run T recurrent PIAgent steps inside a single pallas_call invocation."""
  T, B, in_dim = x_seq.shape
  H = hidden_dim
  A = n_actions
  GA = n_agents * A
  OUT = GA + A
  OUT_PAD = max(128, ((OUT + 127) // 128) * 128)
  bs = B // n_agents

  # ---- one-time weight packing (outside the kernel) ------------------------
  def pack_gates(wq, wp):
    # [r|z|n] x 2 cells -> [r_q|r_p|z_q|z_p|n_q|n_p]
    cols = []
    for g in range(3):
      cols.append(wq[..., g * H:(g + 1) * H])
      cols.append(wp[..., g * H:(g + 1) * H])
    return jnp.concatenate(cols, axis=-1)

  wih_cat = pack_gates(params["wih_q"], params["wih_p"])       # (H, 6H)
  bih_cat = pack_gates(params["bih_q"], params["bih_p"])       # (1, 6H)
  bhh_cat = pack_gates(params["bhh_q"], params["bhh_p"])       # (1, 6H)

  zeros_hh = jnp.zeros((H, H), jnp.float32)
  whh_cols = []
  for g in range(3):
    whh_cols.append(jnp.concatenate(
        [params["whh_q"][:, g * H:(g + 1) * H], zeros_hh], axis=0))
    whh_cols.append(jnp.concatenate(
        [zeros_hh, params["whh_p"][:, g * H:(g + 1) * H]], axis=0))
  whh_cat = jnp.concatenate(whh_cols, axis=-1)                 # (2H, 6H)

  # epilogue weight: columns [0:GA] = pi logits (h_pi only),
  #                  columns [GA:OUT] = q (h_q and h_pi halves of fc_q),
  #                  columns [OUT:OUT_PAD] = zero padding (lane-dense store)
  wep = jnp.zeros((2 * H, OUT_PAD), jnp.float32)
  wep = wep.at[H:, :GA].set(params["wpi"])
  wep = wep.at[:H, GA:OUT].set(params["wq_hq"])
  wep = wep.at[H:, GA:OUT].set(params["wq_hpi"])
  bep = jnp.zeros((1, OUT_PAD), jnp.float32)
  bep = bep.at[:, :GA].set(params["bpi"])
  bep = bep.at[:, GA:OUT].set(params["bq"])

  x_flat = x_seq.reshape(T * B, in_dim)
  h0 = jnp.concatenate([h0_q, h0_pi], axis=-1)                 # (B, 2H)

  kernel = functools.partial(
      _pi_agent_kernel, seq_len=T, batch=B,
      hidden_dim=H, n_agents=n_agents, n_actions=n_actions)

  vmem = pl.BlockSpec(memory_space=pltpu.MemorySpace.VMEM)     # whole array in VMEM

  qpi, hfin = pl.pallas_call(
      kernel,
      out_shape=(
          jax.ShapeDtypeStruct((T * B, OUT_PAD), jnp.float32),
          jax.ShapeDtypeStruct((B, 2 * H), jnp.float32),
      ),
      in_specs=[vmem] * 10,
      out_specs=(vmem, vmem),
      scratch_shapes=[
          pltpu.VMEM((T * B, 6 * H), jnp.float32),   # gi slab
          pltpu.VMEM((T * B, 2 * H), jnp.float32),   # hidden-state slab
      ],
  )(x_flat, h0, params["w1"], params["b1"], wih_cat, bih_cat,
    whh_cat, bhh_cat, wep, bep)

  pi_seq = qpi[:, :GA].reshape(T, bs, n_agents, n_agents, A)
  q_seq = qpi[:, GA:OUT].reshape(T, bs, n_agents, A)
  h_q = hfin[:, :H]
  h_pi = hfin[:, H:]
  return q_seq, h_q, h_pi, pi_seq


def pi_agent_forward(inputs, hidden_state, hidden_pi, params,
                     *, hidden_dim, n_agents, n_actions):
  """Single PIAgent.forward() step (T == 1 rollout)."""
  q_seq, h_q, h_pi, pi_seq = pi_agent_rollout(
      inputs[None], hidden_state, hidden_pi, params,
      hidden_dim=hidden_dim, n_agents=n_agents, n_actions=n_actions)
  return q_seq[0], h_q, h_pi, pi_seq[0]


# ---------------------------------------------------------------------------
# Pure-JAX reference (for correctness checks)
# ---------------------------------------------------------------------------
def pi_agent_forward_ref(inputs, hidden_state, hidden_pi, params,
                         *, hidden_dim, n_agents, n_actions):
  H = hidden_dim
  B = inputs.shape[0]
  bs = B // n_agents
  x = jax.nn.relu(inputs @ params["w1"] + params["b1"])

  def gru(xv, hv, wih, whh, bih, bhh):
    gi = xv @ wih + bih
    gh = hv @ whh + bhh
    r = jax.nn.sigmoid(gi[:, :H] + gh[:, :H])
    z = jax.nn.sigmoid(gi[:, H:2 * H] + gh[:, H:2 * H])
    n = jnp.tanh(gi[:, 2 * H:] + r * gh[:, 2 * H:])
    return (1 - z) * n + z * hv

  h_q = gru(x, hidden_state, params["wih_q"], params["whh_q"],
            params["bih_q"], params["bhh_q"])
  h_pi = gru(x, hidden_pi, params["wih_p"], params["whh_p"],
             params["bih_p"], params["bhh_p"])
  pi_o = (h_pi @ params["wpi"] + params["bpi"]).reshape(
      bs, n_agents, n_agents, n_actions)
  pi_infer = jax.nn.softmax(pi_o, axis=-1)
  q = (h_q @ params["wq_hq"] + h_pi @ params["wq_hpi"] + params["bq"]).reshape(
      bs, n_agents, n_actions)
  return q, h_q, h_pi, pi_infer


def pi_agent_rollout_ref(x_seq, h0_q, h0_pi, params,
                         *, hidden_dim, n_agents, n_actions):
  def step(carry, x):
    hq, hp = carry
    q, hq2, hp2, pi = pi_agent_forward_ref(
        x, hq, hp, params,
        hidden_dim=hidden_dim, n_agents=n_agents, n_actions=n_actions)
    return (hq2, hp2), (q, pi)

  (hq, hp), (q_seq, pi_seq) = jax.lax.scan(step, (h0_q, h0_pi), x_seq)
  return q_seq, hq, hp, pi_seq


# ---------------------------------------------------------------------------
# Main
# ---------------------------------------------------------------------------
if __name__ == "__main__":
  bs, n_agents = 2, 4
  input_shape = 16
  hidden_dim = 32
  n_actions = 8
  B = bs * n_agents
  T = 6

  key = jax.random.PRNGKey(0)
  ks = jax.random.split(key, 24)

  def w(k, shape, scale=0.1):
    return (scale * jax.random.normal(k, shape)).astype(jnp.float32)

  params = {
      # fc1: Linear(input_shape, H)      -> stored (in, out)
      "w1": w(ks[0], (input_shape, hidden_dim)),
      "b1": w(ks[1], (1, hidden_dim)),
      # rnn: GRUCell(H, H)   (gate order r|z|n)
      "wih_q": w(ks[2], (hidden_dim, 3 * hidden_dim)),
      "whh_q": w(ks[3], (hidden_dim, 3 * hidden_dim)),
      "bih_q": w(ks[4], (1, 3 * hidden_dim)),
      "bhh_q": w(ks[5], (1, 3 * hidden_dim)),
      # rnn_o: GRUCell(H, H)
      "wih_p": w(ks[6], (hidden_dim, 3 * hidden_dim)),
      "whh_p": w(ks[7], (hidden_dim, 3 * hidden_dim)),
      "bih_p": w(ks[8], (1, 3 * hidden_dim)),
      "bhh_p": w(ks[9], (1, 3 * hidden_dim)),
      # fc_pi: Linear(H, n_actions * n_agents)
      "wpi": w(ks[10], (hidden_dim, n_agents * n_actions)),
      "bpi": w(ks[11], (1, n_agents * n_actions)),
      # fc_q: Linear(2H, n_actions), split into the h_q half and h_pi half
      # (equivalent to cat((h_q, h_pi), -1) @ W_q^T)
      "wq_hq": w(ks[12], (hidden_dim, n_actions)),
      "wq_hpi": w(ks[13], (hidden_dim, n_actions)),
      "bq": w(ks[14], (1, n_actions)),
  }

  inputs = jax.random.normal(ks[15], (B, input_shape), dtype=jnp.float32)
  hidden_state = jax.random.normal(ks[16], (B, hidden_dim), dtype=jnp.float32)
  hidden_pi = jax.random.normal(ks[17], (B, hidden_dim), dtype=jnp.float32)
  x_seq = jax.random.normal(ks[18], (T, B, input_shape), dtype=jnp.float32)

  # --- single-step forward (exact module semantics) -------------------------
  q, h_q, h_pi, pi_infer = pi_agent_forward(
      inputs, hidden_state, hidden_pi, params,
      hidden_dim=hidden_dim, n_agents=n_agents, n_actions=n_actions)
  jax.block_until_ready((q, h_q, h_pi, pi_infer))

  q_r, hq_r, hpi_r, pi_r = pi_agent_forward_ref(
      inputs, hidden_state, hidden_pi, params,
      hidden_dim=hidden_dim, n_agents=n_agents, n_actions=n_actions)

  assert q.shape == (bs, n_agents, n_actions)
  assert pi_infer.shape == (bs, n_agents, n_agents, n_actions)
  assert jnp.allclose(q, q_r, atol=1e-4), float(jnp.max(jnp.abs(q - q_r)))
  assert jnp.allclose(h_q, hq_r, atol=1e-4)
  assert jnp.allclose(h_pi, hpi_r, atol=1e-4)
  assert jnp.allclose(pi_infer, pi_r, atol=1e-4)   # exact softmax now

  # --- T-step fused rollout (one kernel invocation, state carried in VMEM) --
  q_seq, hq_T, hpi_T, pi_seq = pi_agent_rollout(
      x_seq, hidden_state, hidden_pi, params,
      hidden_dim=hidden_dim, n_agents=n_agents, n_actions=n_actions)
  jax.block_until_ready((q_seq, hq_T, hpi_T, pi_seq))

  qseq_r, hqT_r, hpiT_r, piseq_r = pi_agent_rollout_ref(
      x_seq, hidden_state, hidden_pi, params,
      hidden_dim=hidden_dim, n_agents=n_agents, n_actions=n_actions)

  assert q_seq.shape == (T, bs, n_agents, n_actions)
  assert pi_seq.shape == (T, bs, n_agents, n_agents, n_actions)
  assert jnp.allclose(q_seq, qseq_r, atol=1e-3)
  assert jnp.allclose(hq_T, hqT_r, atol=1e-3)
  assert jnp.allclose(hpi_T, hpiT_r, atol=1e-3)
  assert jnp.allclose(pi_seq, piseq_r, atol=1e-3)

  print("KERNEL_OK")
</pallas_src>

<mosaic_0001>
module attributes {stable_mosaic.version = 11 : i64} {
  func.func @_pi_agent_kernel(%arg0: memref<8x16xf32, #tpu.memory_space<vmem>>, %arg1: memref<8x64xf32, #tpu.memory_space<vmem>>, %arg2: memref<16x32xf32, #tpu.memory_space<vmem>>, %arg3: memref<1x32xf32, #tpu.memory_space<vmem>>, %arg4: memref<32x192xf32, #tpu.memory_space<vmem>>, %arg5: memref<1x192xf32, #tpu.memory_space<vmem>>, %arg6: memref<64x192xf32, #tpu.memory_space<vmem>>, %arg7: memref<1x192xf32, #tpu.memory_space<vmem>>, %arg8: memref<64x128xf32, #tpu.memory_space<vmem>>, %arg9: memref<1x128xf32, #tpu.memory_space<vmem>>, %arg10: memref<8x128xf32, #tpu.memory_space<vmem>>, %arg11: memref<8x64xf32, #tpu.memory_space<vmem>>, %arg12: memref<8x192xf32, #tpu.memory_space<vmem>>, %arg13: memref<8x64xf32, #tpu.memory_space<vmem>>) attributes {dimension_semantics = [], scalar_prefetch = 0 : i64, scratch_operands = 2 : i64, tpu.core_type = #tpu.core_type<tc>} {
    %c0 = arith.constant 0 : index
    %c0_0 = arith.constant 0 : index
    %0 = vector.load %arg0[%c0, %c0_0] : memref<8x16xf32, #tpu.memory_space<vmem>>, vector<8x16xf32>
    %c0_1 = arith.constant 0 : index
    %c0_2 = arith.constant 0 : index
    %1 = vector.load %arg2[%c0_1, %c0_2] : memref<16x32xf32, #tpu.memory_space<vmem>>, vector<16x32xf32>
    %cst = arith.constant dense<0.000000e+00> : vector<8x32xf32>
    %2 = tpu.matmul %0, %1, %cst {dimension_numbers = #tpu.dot_dimension_numbers<[1], [0], [0], [1], [0, 0, 1, 1], [], []>} : vector<8x16xf32>, vector<16x32xf32>, vector<8x32xf32> -> vector<8x32xf32>
    %c0_3 = arith.constant 0 : index
    %c0_4 = arith.constant 0 : index
    %3 = vector.load %arg3[%c0_3, %c0_4] : memref<1x32xf32, #tpu.memory_space<vmem>>, vector<1x32xf32>
    %4 = vector.broadcast %3 : vector<1x32xf32> to vector<8x32xf32>
    %5 = arith.addf %2, %4 : vector<8x32xf32>
    %cst_5 = arith.constant 0.000000e+00 : f32
    %6 = vector.broadcast %cst_5 : f32 to vector<8x32xf32>
    %7 = arith.maximumf %5, %6 : vector<8x32xf32>
    %c0_6 = arith.constant 0 : index
    %c0_7 = arith.constant 0 : index
    %8 = vector.load %arg4[%c0_6, %c0_7] : memref<32x192xf32, #tpu.memory_space<vmem>>, vector<32x192xf32>
    %cst_8 = arith.constant dense<0.000000e+00> : vector<8x192xf32>
    %9 = tpu.matmul %7, %8, %cst_8 {dimension_numbers = #tpu.dot_dimension_numbers<[1], [0], [0], [1], [0, 0, 1, 1], [], []>} : vector<8x32xf32>, vector<32x192xf32>, vector<8x192xf32> -> vector<8x192xf32>
    %c0_9 = arith.constant 0 : index
    %c0_10 = arith.constant 0 : index
    %10 = vector.load %arg5[%c0_9, %c0_10] : memref<1x192xf32, #tpu.memory_space<vmem>>, vector<1x192xf32>
    %11 = vector.broadcast %10 : vector<1x192xf32> to vector<8x192xf32>
    %12 = arith.addf %9, %11 : vector<8x192xf32>
    %c0_11 = arith.constant 0 : index
    %c0_12 = arith.constant 0 : index
    %13 = vector.load %arg12[%c0_11, %c0_12] : memref<8x192xf32, #tpu.memory_space<vmem>>, vector<8x192xf32>
    tpu.vector_store %arg12[%c0_11, %c0_12], %12 {strides = array<i32>} : memref<8x192xf32, #tpu.memory_space<vmem>>, vector<8x192xf32>,
    %c0_13 = arith.constant 0 : index
    %c0_14 = arith.constant 0 : index
    %14 = vector.load %arg1[%c0_13, %c0_14] : memref<8x64xf32, #tpu.memory_space<vmem>>, vector<8x64xf32>
    %c0_15 = arith.constant 0 : index
    %c0_16 = arith.constant 0 : index
    %15 = vector.load %arg12[%c0_15, %c0_16] : memref<8x192xf32, #tpu.memory_space<vmem>>, vector<8x192xf32>
    %c0_17 = arith.constant 0 : index
    %c0_18 = arith.constant 0 : index
    %16 = vector.load %arg6[%c0_17, %c0_18] : memref<64x192xf32, #tpu.memory_space<vmem>>, vector<64x192xf32>
    %cst_19 = arith.constant dense<0.000000e+00> : vector<8x192xf32>
    %17 = tpu.matmul %14, %16, %cst_19 {dimension_numbers = #tpu.dot_dimension_numbers<[1], [0], [0], [1], [0, 0, 1, 1], [], []>} : vector<8x64xf32>, vector<64x192xf32>, vector<8x192xf32> -> vector<8x192xf32>
    %c0_20 = arith.constant 0 : index
    %c0_21 = arith.constant 0 : index
    %18 = vector.load %arg7[%c0_20, %c0_21] : memref<1x192xf32, #tpu.memory_space<vmem>>, vector<1x192xf32>
    %19 = vector.broadcast %18 : vector<1x192xf32> to vector<8x192xf32>
    %20 = arith.addf %17, %19 : vector<8x192xf32>
    %21 = vector.extract_strided_slice %15 {offsets = [0, 0], sizes = [8, 128], strides = [1, 1]} : vector<8x192xf32> to vector<8x128xf32>
    %22 = vector.extract_strided_slice %20 {offsets = [0, 0], sizes = [8, 128], strides = [1, 1]} : vector<8x192xf32> to vector<8x128xf32>
    %23 = arith.addf %21, %22 : vector<8x128xf32>
    %24 = arith.negf %23 : vector<8x128xf32>
    %25 = math.exp %24 : vector<8x128xf32>
    %cst_22 = arith.constant 1.000000e+00 : f32
    %26 = vector.broadcast %cst_22 : f32 to vector<8x128xf32>
    %27 = arith.addf %26, %25 : vector<8x128xf32>
    %28 = arith.divf %26, %27 : vector<8x128xf32>
    %29 = vector.extract_strided_slice %28 {offsets = [0, 0], sizes = [8, 64], strides = [1, 1]} : vector<8x128xf32> to vector<8x64xf32>
    %30 = vector.extract_strided_slice %28 {offsets = [0, 64], sizes = [8, 64], strides = [1, 1]} : vector<8x128xf32> to vector<8x64xf32>
    %31 = vector.extract_strided_slice %15 {offsets = [0, 128], sizes = [8, 64], strides = [1, 1]} : vector<8x192xf32> to vector<8x64xf32>
    %32 = vector.extract_strided_slice %20 {offsets = [0, 128], sizes = [8, 64], strides = [1, 1]} : vector<8x192xf32> to vector<8x64xf32>
    %33 = arith.mulf %29, %32 : vector<8x64xf32>
    %34 = arith.addf %31, %33 : vector<8x64xf32>
    %35 = math.tanh %34 : vector<8x64xf32>
    %cst_23 = arith.constant 1.000000e+00 : f32
    %36 = vector.broadcast %cst_23 : f32 to vector<8x64xf32>
    %37 = arith.subf %36, %30 : vector<8x64xf32>
    %38 = arith.mulf %37, %35 : vector<8x64xf32>
    %39 = arith.mulf %30, %14 : vector<8x64xf32>
    %40 = arith.addf %38, %39 : vector<8x64xf32>
    %c0_24 = arith.constant 0 : index
    %c0_25 = arith.constant 0 : index
    %41 = vector.load %arg13[%c0_24, %c0_25] : memref<8x64xf32, #tpu.memory_space<vmem>>, vector<8x64xf32>
    tpu.vector_store %arg13[%c0_24, %c0_25], %40 {strides = array<i32>} : memref<8x64xf32, #tpu.memory_space<vmem>>, vector<8x64xf32>,
    %c0_26 = arith.constant 0 : index
    %c0_27 = arith.constant 0 : index
    %42 = vector.load %arg11[%c0_26, %c0_27] : memref<8x64xf32, #tpu.memory_space<vmem>>, vector<8x64xf32>
    tpu.vector_store %arg11[%c0_26, %c0_27], %40 {strides = array<i32>} : memref<8x64xf32, #tpu.memory_space<vmem>>, vector<8x64xf32>,
    %c0_28 = arith.constant 0 : index
    %c0_29 = arith.constant 0 : index
    %43 = vector.load %arg13[%c0_28, %c0_29] : memref<8x64xf32, #tpu.memory_space<vmem>>, vector<8x64xf32>
    %c0_30 = arith.constant 0 : index
    %c0_31 = arith.constant 0 : index
    %44 = vector.load %arg8[%c0_30, %c0_31] : memref<64x128xf32, #tpu.memory_space<vmem>>, vector<64x128xf32>
    %cst_32 = arith.constant dense<0.000000e+00> : vector<8x128xf32>
    %45 = tpu.matmul %43, %44, %cst_32 {dimension_numbers = #tpu.dot_dimension_numbers<[1], [0], [0], [1], [0, 0, 1, 1], [], []>} : vector<8x64xf32>, vector<64x128xf32>, vector<8x128xf32> -> vector<8x128xf32>
    %c0_33 = arith.constant 0 : index
    %c0_34 = arith.constant 0 : index
    %46 = vector.load %arg9[%c0_33, %c0_34] : memref<1x128xf32, #tpu.memory_space<vmem>>, vector<1x128xf32>
    %47 = vector.broadcast %46 : vector<1x128xf32> to vector<8x128xf32>
    %48 = arith.addf %45, %47 : vector<8x128xf32>
    %c0_35 = arith.constant 0 : index
    %c0_36 = arith.constant 0 : index
    %49 = vector.load %arg10[%c0_35, %c0_36] : memref<8x128xf32, #tpu.memory_space<vmem>>, vector<8x128xf32>
    tpu.vector_store %arg10[%c0_35, %c0_36], %48 {strides = array<i32>} : memref<8x128xf32, #tpu.memory_space<vmem>>, vector<8x128xf32>,
    %50 = vector.extract_strided_slice %48 {offsets = [0, 0], sizes = [8, 8], strides = [1, 1]} : vector<8x128xf32> to vector<8x8xf32>
    %cst_37 = arith.constant dense<0xFF800000> : vector<8xf32>
    %51 = vector.multi_reduction <maximumf>, %50, %cst_37 [1] : vector<8x8xf32> to vector<8xf32>
    %52 = vector.shape_cast %51 : vector<8xf32> to vector<8x1xf32>
    %53 = vector.broadcast %52 : vector<8x1xf32> to vector<8x8xf32>
    %54 = arith.subf %50, %53 : vector<8x8xf32>
    %55 = math.exp %54 : vector<8x8xf32>
    %cst_38 = arith.constant dense<0.000000e+00> : vector<8xf32>
    %56 = vector.multi_reduction <add>, %55, %cst_38 [1] : vector<8x8xf32> to vector<8xf32>
    %57 = vector.shape_cast %56 : vector<8xf32> to vector<8x1xf32>
    %58 = vector.broadcast %57 : vector<8x1xf32> to vector<8x8xf32>
    %59 = arith.divf %55, %58 : vector<8x8xf32>
    %c0_39 = arith.constant 0 : index
    %c0_40 = arith.constant 0 : index
    %60 = vector.load %arg10[%c0_39, %c0_40] : memref<8x128xf32, #tpu.memory_space<vmem>>, vector<8x8xf32>
    tpu.vector_store %arg10[%c0_39, %c0_40], %59 {strides = array<i32>} : memref<8x128xf32, #tpu.memory_space<vmem>>, vector<8x8xf32>,
    %61 = vector.extract_strided_slice %48 {offsets = [0, 8], sizes = [8, 8], strides = [1, 1]} : vector<8x128xf32> to vector<8x8xf32>
    %cst_41 = arith.constant dense<0xFF800000> : vector<8xf32>
    %62 = vector.multi_reduction <maximumf>, %61, %cst_41 [1] : vector<8x8xf32> to vector<8xf32>
    %63 = vector.shape_cast %62 : vector<8xf32> to vector<8x1xf32>
    %64 = vector.broadcast %63 : vector<8x1xf32> to vector<8x8xf32>
    %65 = arith.subf %61, %64 : vector<8x8xf32>
    %66 = math.exp %65 : vector<8x8xf32>
    %cst_42 = arith.constant dense<0.000000e+00> : vector<8xf32>
    %67 = vector.multi_reduction <add>, %66, %cst_42 [1] : vector<8x8xf32> to vector<8xf32>
    %68 = vector.shape_cast %67 : vector<8xf32> to vector<8x1xf32>
    %69 = vector.broadcast %68 : vector<8x1xf32> to vector<8x8xf32>
    %70 = arith.divf %66, %69 : vector<8x8xf32>
    %c0_43 = arith.constant 0 : index
    %c8 = arith.constant 8 : index
    %71 = vector.load %arg10[%c0_43, %c8] : memref<8x128xf32, #tpu.memory_space<vmem>>, vector<8x8xf32>
    tpu.vector_store %arg10[%c0_43, %c8], %70 {strides = array<i32>} : memref<8x128xf32, #tpu.memory_space<vmem>>, vector<8x8xf32>,
    %72 = vector.extract_strided_slice %48 {offsets = [0, 16], sizes = [8, 8], strides = [1, 1]} : vector<8x128xf32> to vector<8x8xf32>
    %cst_44 = arith.constant dense<0xFF800000> : vector<8xf32>
    %73 = vector.multi_reduction <maximumf>, %72, %cst_44 [1] : vector<8x8xf32> to vector<8xf32>
    %74 = vector.shape_cast %73 : vector<8xf32> to vector<8x1xf32>
    %75 = vector.broadcast %74 : vector<8x1xf32> to vector<8x8xf32>
    %76 = arith.subf %72, %75 : vector<8x8xf32>
    %77 = math.exp %76 : vector<8x8xf32>
    %cst_45 = arith.constant dense<0.000000e+00> : vector<8xf32>
    %78 = vector.multi_reduction <add>, %77, %cst_45 [1] : vector<8x8xf32> to vector<8xf32>
    %79 = vector.shape_cast %78 : vector<8xf32> to vector<8x1xf32>
    %80 = vector.broadcast %79 : vector<8x1xf32> to vector<8x8xf32>
    %81 = arith.divf %77, %80 : vector<8x8xf32>
    %c0_46 = arith.constant 0 : index
    %c16 = arith.constant 16 : index
    %82 = vector.load %arg10[%c0_46, %c16] : memref<8x128xf32, #tpu.memory_space<vmem>>, vector<8x8xf32>
    tpu.vector_store %arg10[%c0_46, %c16], %81 {strides = array<i32>} : memref<8x128xf32, #tpu.memory_space<vmem>>, vector<8x8xf32>,
    %83 = vector.extract_strided_slice %48 {offsets = [0, 24], sizes = [8, 8], strides = [1, 1]} : vector<8x128xf32> to vector<8x8xf32>
    %cst_47 = arith.constant dense<0xFF800000> : vector<8xf32>
    %84 = vector.multi_reduction <maximumf>, %83, %cst_47 [1] : vector<8x8xf32> to vector<8xf32>
    %85 = vector.shape_cast %84 : vector<8xf32> to vector<8x1xf32>
    %86 = vector.broadcast %85 : vector<8x1xf32> to vector<8x8xf32>
    %87 = arith.subf %83, %86 : vector<8x8xf32>
    %88 = math.exp %87 : vector<8x8xf32>
    %cst_48 = arith.constant dense<0.000000e+00> : vector<8xf32>
    %89 = vector.multi_reduction <add>, %88, %cst_48 [1] : vector<8x8xf32> to vector<8xf32>
    %90 = vector.shape_cast %89 : vector<8xf32> to vector<8x1xf32>
    %91 = vector.broadcast %90 : vector<8x1xf32> to vector<8x8xf32>
    %92 = arith.divf %88, %91 : vector<8x8xf32>
    %c0_49 = arith.constant 0 : index
    %c24 = arith.constant 24 : index
    %93 = vector.load %arg10[%c0_49, %c24] : memref<8x128xf32, #tpu.memory_space<vmem>>, vector<8x8xf32>
    tpu.vector_store %arg10[%c0_49, %c24], %92 {strides = array<i32>} : memref<8x128xf32, #tpu.memory_space<vmem>>, vector<8x8xf32>,
    return
  }
}

</mosaic_0001>

<bundles_post_ra>
// kernel: tpu_custom_call.1
= control target key start
LH: loop header
LB: loop body
LE: loop exit
PB: predicated region body
PF: predicated region fallthrough
CT: control target
= control target key end

     0   :  { %17 = vsyncpa [#allocation5], 0  ;;  %s1028_s0 = inlined_call_operand.hbm [shape: f32[8,16], index: 0, kind: input, shape index: {}]   ;;  %s1029_s1 = inlined_call_operand.hbm [shape: f32[8,64], index: 1, kind: input, shape index: {}]   ;;  %s1030_s2 = inlined_call_operand.hbm [shape: f32[16,32], index: 2, kind: input, shape index: {}]   ;;  %s1031_s3 = inlined_call_operand.vmem [shape: f32[1,32], index: 3, kind: input, shape index: {}]   ;;  %s1032_s4 = inlined_call_operand.hbm [shape: f32[32,192], index: 4, kind: input, shape index: {}]   ;;  %s1033_s5 = inlined_call_operand.vmem [shape: f32[1,192], index: 5, kind: input, shape index: {}]   ;;  %s1034_s6 = inlined_call_operand.hbm [shape: f32[64,192], index: 6, kind: input, shape index: {}]   ;;  %s1035_s7 = inlined_call_operand.vmem [shape: f32[1,192], index: 7, kind: input, shape index: {}]   ;;  %s1036_s8 = inlined_call_operand.hbm [shape: f32[64,128], index: 8, kind: input, shape index: {}]   ;;  %s1037_s9 = inlined_call_operand.vmem [shape: f32[1,128], index: 9, kind: input, shape index: {}]   ;;  %s1038_s10 = inlined_call_operand.hbm [shape: f32[8,128], index: 10, kind: output, shape index: {0}]   ;;  %s1039_s11 = inlined_call_operand.hbm [shape: f32[8,64], index: 11, kind: output, shape index: {1}]  }
   0x1   :  { %18 = vsyncpa [#allocation8], 0 }
   0x2   :  { %19 = vsyncpa [#allocation11], 0 }
   0x3   :  { %20 = vsyncpa [#allocation14], 0 }
   0x4   :  { %21 = vsyncpa [#allocation6], 0 }
   0x5   :  { %22 = vsyncpa [#allocation17], 0  ;;  %s875_s17 = smov [#allocation7]   ;;  %s876_s19 = smov [#allocation10]  }
   0x6   :  { %s39_s18 = sshll.u32 %s875_s17, 4  ;;  %s62_s20 = sshll.u32 %s876_s19, 4  ;;  %s40_s18 = int_to_ptr.vmem [resolvable:$true] %s39_s18  ;;  %s63_s20 = int_to_ptr.vmem [resolvable:$true] %s62_s20 }
   0x7   :  { %s711_s21 = scalar_lea.vmem %s40_s18, 128  ;;  %p716_p1 = scmp.lt.s32.totalorder %s40_s18, %s40_s18 }
   0x8   :  { %p712_p0 = scmp.ne.s32.totalorder %s40_s18, %s711_s21  ;;  %p717_p2 = scmp.lt.s32.totalorder %s711_s21, %s711_s21 }
   0xa   :  { %p718_p3 = por %p717_p2, %p716_p1 }
   0xc   :  { %p719_p4 = pnand %p718_p3, %p712_p0 }
   0xe   :  { %722 = shalt.err (!%p719_p4)
}
   0xf   :  { %42 = dma.hbm_to_vmem [thread:$0]  %s1029_s1, 128, %s40_s18, [#allocation8]  }
  0x10   :  { %s731_s24 = scalar_lea.vmem %s63_s20, 1024  ;;  %p736_p6 = scmp.lt.s32.totalorder %s63_s20, %s63_s20 }
  0x11   :  { %p732_p5 = scmp.ne.s32.totalorder %s63_s20, %s731_s24  ;;  %p737_p7 = scmp.lt.s32.totalorder %s731_s24, %s731_s24 }
  0x13   :  { %p738_p8 = por %p737_p7, %p736_p6 }
  0x15   :  { %p739_p9 = pnand %p738_p8, %p732_p5 }
  0x17   :  { %742 = shalt.err (!%p739_p9)
}
  0x18   :  { %s877_s25 = smov 256   ;;  %s878_s26 = smov 16  }
  0x19   :  { %68 = dma.hbm_to_vmem [thread:$0]  %s1032_s4, 1024, %s63_s20, [#allocation11], %s877_s25, %s877_s25, %s878_s26  }
  0x1a   :  { %s879_s29 = smov [#allocation4]   ;;  %s880_s12 = smov [#allocation9]  }
  0x1b   :  { %s29_s30 = sshll.u32 %s879_s29, 4  ;;  %s48_s1 = sshll.u32 %s880_s12, 4  ;;  %s30_s30 = int_to_ptr.vmem [resolvable:$true] %s29_s30  ;;  %s49_s1 = int_to_ptr.vmem [resolvable:$true] %s48_s1 }
  0x1c   :  { %s751_s13 = scalar_lea.vmem %s30_s30, 128  ;;  %p756_p11 = scmp.lt.s32.totalorder %s30_s30, %s30_s30 }
  0x1d   :  { %p752_p10 = scmp.ne.s32.totalorder %s30_s30, %s751_s13  ;;  %p757_p12 = scmp.lt.s32.totalorder %s751_s13, %s751_s13 }
  0x1f   :  { %p758_p13 = por %p757_p12, %p756_p11 }
  0x21   :  { %p759_p0 = pnand %p758_p13, %p752_p10 }
  0x23   :  { %762 = shalt.err (!%p759_p0)
}
  0x24   :  { %32 = dma.hbm_to_vmem [thread:$0]  %s1028_s0, 128, %s30_s30, [#allocation5]  }
  0x25   :  { %s771_s16 = scalar_lea.vmem %s49_s1, 256  ;;  %p776_p2 = scmp.lt.s32.totalorder %s49_s1, %s49_s1 }
  0x26   :  { %p772_p1 = scmp.ne.s32.totalorder %s49_s1, %s771_s16  ;;  %p777_p3 = scmp.lt.s32.totalorder %s771_s16, %s771_s16 }
  0x28   :  { %p778_p4 = por %p777_p3, %p776_p2 }
  0x2a   :  { %p779_p5 = pnand %p778_p4, %p772_p1 }
  0x2c   :  { %782 = shalt.err (!%p779_p5)
}
  0x2d   :  { %s881_s4 = smov 128   ;;  %s882_s17 = smov 8  }
  0x2e   :  { %54 = dma.hbm_to_vmem [thread:$0]  %s1030_s2, 256, %s49_s1, [#allocation8], %s881_s4, %s881_s4, %s882_s17  }
  0x2f   :  { %s883_s20 = smov [#allocation12]   ;;  %s884_s22 = smov [#allocation13]  }
  0x30   :  { %s76_s21 = sshll.u32 %s883_s20, 4  ;;  %s90_s23 = sshll.u32 %s884_s22, 4  ;;  %s77_s21 = int_to_ptr.vmem [resolvable:$true] %s76_s21  ;;  %s91_s23 = int_to_ptr.vmem [resolvable:$true] %s90_s23 }
  0x31   :  { %s791_s0 = scalar_lea.vmem %s77_s21, 2048  ;;  %p796_p7 = scmp.lt.s32.totalorder %s77_s21, %s77_s21 }
  0x32   :  { %p792_p6 = scmp.ne.s32.totalorder %s77_s21, %s791_s0  ;;  %p797_p8 = scmp.lt.s32.totalorder %s791_s0, %s791_s0 }
  0x34   :  { %p798_p9 = por %p797_p8, %p796_p7 }
  0x36   :  { %p799_p10 = pnand %p798_p9, %p792_p6 }
  0x38   :  { %802 = shalt.err (!%p799_p10)
}
  0x39   :  { %82 = dma.hbm_to_vmem [thread:$0]  %s1034_s6, 2048, %s77_s21, [#allocation11], %s877_s25, %s877_s25, %s878_s26  }
  0x3a   :  { %s811_s2 = scalar_lea.vmem %s91_s23, 1024  ;;  %p816_p12 = scmp.lt.s32.totalorder %s91_s23, %s91_s23 }
  0x3b   :  { %p812_p11 = scmp.ne.s32.totalorder %s91_s23, %s811_s2  ;;  %p817_p13 = scmp.lt.s32.totalorder %s811_s2, %s811_s2 }
  0x3d   :  { %p818_p0 = por %p817_p13, %p816_p12 }
  0x3f   :  { %p819_p1 = pnand %p818_p0, %p812_p11 }
  0x41   :  { %822 = shalt.err (!%p819_p1)
}
  0x42   :  { %96 = dma.hbm_to_vmem [thread:$0]  %s1036_s8, 1024, %s91_s23, [#allocation14], %s881_s4, %s881_s4, %s882_s17  }
  0x43   :  { %863 = dma.done.wait [#allocation5], 128  }
  0x44   :  { %864 = vsyncadd [#allocation5], 4294967168 }
  0x45   :  { %865 = dma.done.wait [#allocation8], 384  }
  0x46   :  { %866 = vsyncadd [#allocation8], 4294966912 }
  0x47   :  { %867 = dma.done.wait [#allocation11], 3072  }
  0x48   :  { %868 = vsyncadd [#allocation11], 4294964224 }
  0x49   :  { %869 = dma.done.wait [#allocation14], 1024  }
  0x4a   :  { %870 = vsyncadd [#allocation14], 4294966272  ;;  %v885_v0 = vmov 0.0   ;;  %vm886_vm0 = vmmov 0   ;;  %v119_v1 = vld [vmem:[#allocation9 + $0x8] sm:$0xff]  ;;  %v118_v2 = vld [vmem:[#allocation9] sm:$0xff]  ;;  %v212_v34 = vlaneseq }
  0x4b   :  { %637 = vmatprep.subr.mxu0 %v885_v0  ;;  %641 = vmatprep.mubr.msk.f32.mxu0 %vm886_vm0, %v885_v0  ;;  %v117_v3 = vld [vmem:[#allocation4] sm:$0xff]  ;;  %vm127_vm1 = vcmask 130048   ;;  %v318_v4 = vld [vmem:[#allocation12 + $0x78] sm:$0xff]  ;;  %v317_v6 = vld [vmem:[#allocation12 + $0x70] sm:$0xff]  ;;  %vm298_vm2 = vcmask 523264   ;;  %vm222_vm3 = vcmask 261120  }
  0x4c   :  { %290 = vmatprep.mubr.f32.mxu1 %v885_v0  ;;  %638 = vmatpush3.msra.mxu0 %v119_v1  ;;  %v209_v5 = vld [vmem:[#allocation10 + $0x38] sm:$0xff]  ;;  %v208_v7 = vld [vmem:[#allocation10 + $0x30] sm:$0xff]  ;;  %v316_v8 = vld [vmem:[#allocation12 + $0x68] sm:$0xff]  ;;  %v213_v35 = vshrl.u32 %v212_v34, 7  ;;  %vm552_vm4 = vcmask 195712   ;;  %vm535_vm5 = vcmask 130112  }
  0x4d   :  { %639 = vmatprep.subr.mxu0 %v885_v0  ;;  %250 = vmatprep.subr.mxu1 %v209_v5  ;;  %v207_v9 = vld [vmem:[#allocation10 + $0x28] sm:$0xff]  ;;  %v315_v10 = vld [vmem:[#allocation12 + $0x60] sm:$0xff]  ;;  %v314_v11 = vld [vmem:[#allocation12 + $0x58] sm:$0xff]  ;;  %vm569_vm6 = vcmask 261312   ;;  %vm522_vm7 = vcmask 64512   ;;  %s889_s1 = smov 120  }
  0x4e   :  { %640 = vmatpush3.msra.mxu0 %v118_v2  ;;  %251 = vmatpush1.msra.mxu1 %v208_v7  ;;  %v313_v12 = vld [vmem:[#allocation12 + $0x50] sm:$0xff]  ;;  %v312_v13 = vld [vmem:[#allocation12 + $0x48] sm:$0xff]  ;;  %v311_v14 = vld [vmem:[#allocation12 + $0x40] sm:$0xff]  ;;  %v214_v36 = vsub.s32 0, %v213_v35  ;;  %v218_v41 = vsub.s32 1, %v213_v35  ;;  %s890_s13 = smov 104  }
  0x4f   :  { %642 = vmatmul.mubr.msk.f32.vlgmr.msra.gmra.mxu0 %vm127_vm1, %v117_v3  ;;  %350 = vmatprep.subr.mxu0 %v318_v4  ;;  %v310_v15 = vld [vmem:[#allocation12 + $0x38] sm:$0xff]  ;;  %v309_v16 = vld [vmem:[#allocation12 + $0x30] sm:$0xff]  ;;  %v308_v17 = vld [vmem:[#allocation12 + $0x28] sm:$0xff]  ;;  %s891_s14 = smov [#allocation16]  }
  0x50   :  { %351 = vmatpush1.msra.mxu0 %v317_v6  ;;  %252 = vmatprep.subr.mxu1 %v207_v9  ;;  %v307_v18 = vld [vmem:[#allocation12 + $0x20] sm:$0xff]  ;;  %v306_v19 = vld [vmem:[#allocation12 + $0x18] sm:$0xff]  ;;  %v305_v21 = vld [vmem:[#allocation12 + $0x10] sm:$0xff]  ;;  %s602_s15 = sshll.u32 %s891_s14, 4  ;;  %s603_s15 = int_to_ptr.vmem [resolvable:$true] %s602_s15 }
  0x51   :  { %352 = vmatprep.subr.mxu0 %v316_v8  ;;  %398 = vmatprep.mubr.f32.mxu0 %v885_v0  ;;  %v206_v20 = vld [vmem:[#allocation10 + $0x20] sm:$0xff]  ;;  %v205_v22 = vld [vmem:[#allocation10 + $0x18] sm:$0xff]  ;;  %v304_v23 = vld [vmem:[#allocation12 + $0x8] sm:$0xff]  ;;  %s823_s16 = scalar_lea.vmem %s603_s15, 128  ;;  %p828_p3 = scmp.lt.s32.totalorder %s603_s15, %s603_s15 }
  0x52   :  { %353 = vmatpush1.msra.mxu0 %v315_v10  ;;  %253 = vmatpush1.msra.mxu1 %v206_v20  ;;  %v204_v24 = vld [vmem:[#allocation10 + $0x10] sm:$0xff]  ;;  %v303_v25 = vld [vmem:[#allocation12] sm:$0xff]  ;;  %v203_v26 = vld [vmem:[#allocation10 + $0x8] sm:$0xff]  ;;  %p824_p2 = scmp.ne.s32.totalorder %s603_s15, %s823_s16  ;;  %p829_p4 = scmp.lt.s32.totalorder %s823_s16, %s823_s16 }
  0x53   :  { %354 = vmatprep.subr.mxu0 %v314_v11  ;;  %254 = vmatprep.subr.mxu1 %v205_v22  ;;  %v300_v27 = vld [vmem:[#allocation7] sm:$0xff]  ;;  %v202_v28 = vld [vmem:[#allocation10] sm:$0xff]  ;;  %v440_v60 = vld [vmem:[#allocation13 + $0x38] sm:$0xff] }
  0x54   :  { %355 = vmatpush1.msra.mxu0 %v313_v12  ;;  %255 = vmatpush1.msra.mxu1 %v204_v24  ;;  %v618_v29 = vld [vmem:[%s1031_s3] ss:$0 sm:$0xff]  ;;  %v439_v61 = vld [vmem:[#allocation13 + $0x30] sm:$0xff]  ;;  %v437_v1 = vld [vmem:[#allocation13 + $0x20] sm:$0xff]  ;;  %s887_s3 = smov 64   ;;  %p830_p5 = por %p829_p4, %p828_p3 }
  0x55   :  { %356 = vmatprep.subr.mxu0 %v312_v13  ;;  %256 = vmatprep.subr.mxu1 %v203_v26  ;;  %v319_v37 = vld [vmem:[%s1035_s7] sm:$0x3]  ;;  %v436_v2 = vld [vmem:[#allocation13 + $0x18] sm:$0xff]  ;;  %v435_v3 = vld [vmem:[#allocation13 + $0x10] sm:$0xff] }
  0x56   :  { %357 = vmatpush1.msra.mxu0 %v311_v14  ;;  %257 = vmatpush1.msra.mxu1 %v202_v28  ;;  %v210_v38 = vld [vmem:[%s1033_s5] sm:$0x3]  ;;  %v324_v39 = vrot.slane %v319_v37, %v214_v36  ;;  %v328_v53 = vrot.slane %v319_v37, %v218_v41  ;;  %v433_v6 = vld [vmem:[#allocation13] sm:$0xff]  ;;  %p831_p6 = pnand %p830_p5, %p824_p2 }
  0x57   :  { %358 = vmatprep.subr.mxu0 %v310_v15  ;;  %644 = vmatprep.subr.mxu1 %v885_v0  ;;  %v215_v40 = vrot.slane %v210_v38, %v214_v36  ;;  %v219_v43 = vrot.slane %v210_v38, %v218_v41  ;;  %v438_v62 = vld [vmem:[#allocation13 + $0x28] sm:$0xff] }
  0x58   :  { %359 = vmatpush1.msra.mxu0 %v309_v16  ;;  %v434_v4 = vld [vmem:[#allocation13 + $0x8] sm:$0xff] }
  0x59   :  { %360 = vmatprep.subr.mxu0 %v308_v17  ;;  %v623_v14 = vld [vmem:[%s1037_s9] ss:$0 sm:$0xff]  ;;  %s888_s9 = smov 112  }
  0x5a   :  { %361 = vmatpush1.msra.mxu0 %v307_v18 }
  0x5b   :  { %362 = vmatprep.subr.mxu0 %v306_v19 }
  0x5c   :  { %363 = vmatpush1.msra.mxu0 %v305_v21 }
  0x5d   :  { %364 = vmatprep.subr.mxu0 %v304_v23 }
  0x5e   :  { %365 = vmatpush1.msra.mxu0 %v303_v25 }
  0x5f   :  { %621 = vmatmul.mubr.msk.f32.vlgmr.msra.gmra.mxu0 %vm298_vm2, %v300_v27 }
 0x10f   :  { %v197_v30 = vpop.f32.mrf.mxu0 }
 0x110   :  { %v198_v31 = vadd.f32 %v618_v29, %v197_v30 }
 0x111   :  { %v643_v32 = vpop.f32.mrf.mxu0 }
 0x112   :  { %v201_v33 = vmax.f32 %v198_v31, 0.0 }
 0x114   :  { %620 = vmatmul.mubr.msk.f32.vlgmr.msra.gmra.mxu1 %vm222_vm3, %v201_v33 }
 0x115   :  { %660 = vmatprep.mubr.msk.f32.mxu1 %vm886_vm0, %v885_v0  ;;  %645 = vmatpush3.msra.mxu1 %v440_v60 }
 0x116   :  { %646 = vmatprep.subr.mxu1 %v885_v0 }
 0x117   :  { %647 = vmatpush3.msra.mxu1 %v439_v61 }
 0x118   :  { %648 = vmatprep.subr.mxu1 %v885_v0 }
 0x119   :  { %649 = vmatpush3.msra.mxu1 %v438_v62 }
 0x11a   :  { %650 = vmatprep.subr.mxu1 %v885_v0 }
 0x11b   :  { %651 = vmatpush3.msra.mxu1 %v437_v1 }
 0x11c   :  { %652 = vmatprep.subr.mxu1 %v885_v0 }
 0x11d   :  { %653 = vmatpush3.msra.mxu1 %v436_v2 }
 0x11e   :  { %654 = vmatprep.subr.mxu1 %v885_v0 }
 0x11f   :  { %v400_v42 = vpop.f32.mrf.mxu0  ;;  %655 = vmatpush3.msra.mxu1 %v435_v3 }
 0x120   :  { %v401_v44 = vadd.f32 %v400_v42, %v324_v39  ;;  %656 = vmatprep.subr.mxu1 %v885_v0 }
 0x121   :  { %v402_v54 = vpop.f32.mrf.mxu0  ;;  %657 = vmatpush3.msra.mxu1 %v434_v4 }
 0x122   :  { %v403_v55 = vadd.f32 %v402_v54, %v328_v53  ;;  %658 = vmatprep.subr.mxu1 %v885_v0 }
 0x123   :  { %659 = vmatpush3.msra.mxu1 %v433_v6 }
 0x1d4   :  { %v292_v45 = vpop.f32.mrf.mxu1 }
 0x1d5   :  { %v293_v46 = vadd.f32 %v292_v45, %v215_v40 }
 0x1d6   :  { %v294_v47 = vpop.f32.mrf.mxu1 }
 0x1d7   :  { %v295_v48 = vadd.f32 %v294_v47, %v219_v43  ;;  %v405_v49 = vadd.f32 %v401_v44, %v293_v46 }
 0x1d9   :  { %299 = vst.msk [vmem:[#allocation2 + $0x8] sm:$0xff] %vm298_vm2, %v295_v48  ;;  %v622_v50 = vmul.f32 -1.442695, %v405_v49 }
 0x1db   :  { %681 = vpow2.f32 %v622_v50 }
 0x1e0   :  { %v302_v58 = vld [vmem:[#allocation2 + $0x8] sm:$0xff] }
 0x1e8   :  { %v682_v51 = vpop.eup %681 }
 0x1e9   :  { %v409_v52 = vadd.f32 1.0, %v682_v51 }
 0x1eb   :  { %683 = vrcp.f32 %v409_v52 }
 0x1f8   :  { %v684_v56 = vpop.eup %683 }
 0x1f9   :  { %v412_v57 = vmul.f32 %v684_v56, %v403_v55  ;;  %v415_v7 = vsub.f32 1.0, %v684_v56 }
 0x1fb   :  { %v413_v59 = vadd.f32 %v412_v57, %v302_v58 }
 0x1fd   :  { %685 = vtanh.f32 %v413_v59 }
 0x20a   :  { %v686_v63 = vpop.eup %685 }
 0x20b   :  { %417 = vrot.lane.b32.xlu0 %v686_v63, %s887_s3 }
 0x20f   :  { %421 = vrot.lane.b32.xlu0 %v300_v27, %s887_s3 }
 0x27d   :  { %v418_v5 = vpop.permute.xlu0 %417 }
 0x27e   :  { %v420_v9 = vmul.f32 %v418_v5, %v415_v7 }
 0x281   :  { %v422_v8 = vpop.permute.xlu0 %421 }
 0x282   :  { %v424_v10 = vmul.f32 %v684_v56, %v422_v8 }
 0x284   :  { %v425_v11 = vadd.f32 %v424_v10, %v420_v9 }
 0x286   :  { %427 = vrot.lane.b32.xlu1 %v425_v11, %s887_s3 }
 0x2f8   :  { %v428_v12 = vpop.permute.xlu1 %427 }
 0x2f9   :  { %430 = vst.msk [vmem:[#allocation3] sm:$0xff] %vm298_vm2, %v428_v12  ;;  %431 = vst.msk [vmem:[#allocation16] sm:$0xff] %vm298_vm2, %v428_v12 }
 0x300   :  { %v432_v13 = vld [vmem:[#allocation3] sm:$0xff] }
 0x301   :  { %661 = vmatmul.mubr.msk.f32.vlgmr.msra.gmra.mxu1 %vm298_vm2, %v432_v13 }
 0x3c1   :  { %v517_v0 = vpop.f32.mrf.mxu1 }
 0x3c2   :  { %v518_v15 = vadd.f32 %v623_v14, %v517_v0 }
 0x3c3   :  { %v662_v16 = vpop.f32.mrf.mxu1 }
 0x3c4   :  { %521 = vst [vmem:[#allocation15] sm:$0xff] %v518_v15  ;;  %v553_v17 = vsel %vm552_vm4, %v518_v15, -inf  ;;  %v536_v18 = vsel %vm535_vm5, %v518_v15, -inf  ;;  %v570_v19 = vsel %vm569_vm6, %v518_v15, -inf  ;;  %v523_v20 = vsel %vm522_vm7, %v518_v15, -inf }
 0x3c5   :  { %554 = vmax.xlane.f32.xlu0 %v553_v17  ;;  %537 = vmax.xlane.f32.xlu1 %v536_v18 }
 0x3c9   :  { %571 = vmax.xlane.f32.xlu0 %v570_v19  ;;  %524 = vmax.xlane.f32.xlu1 %v523_v20 }
 0x44e   :  { %v555_v21 = vpop.xlane.xlu0 %554  ;;  %v538_v22 = vpop.xlane.xlu1 %537 }
 0x44f   :  { %v556_v23 = vsub.f32 %v518_v15, %v555_v21  ;;  %v539_v24 = vsub.f32 %v518_v15, %v538_v22 }
 0x451   :  { %v557_v25 = vmul.f32 1.442695, %v556_v23  ;;  %v540_v26 = vmul.f32 1.442695, %v539_v24 }
 0x452   :  { %v572_v27 = vpop.xlane.xlu0 %571  ;;  %v525_v33 = vpop.xlane.xlu1 %524 }
 0x453   :  { %687 = vpow2.f32 %v557_v25  ;;  %v573_v28 = vsub.f32 %v518_v15, %v572_v27  ;;  %v526_v34 = vsub.f32 %v518_v15, %v525_v33 }
 0x454   :  { %689 = vpow2.f32 %v540_v26 }
 0x455   :  { %v574_v29 = vmul.f32 1.442695, %v573_v28  ;;  %v527_v35 = vmul.f32 1.442695, %v526_v34 }
 0x457   :  { %691 = vpow2.f32 %v574_v29 }
 0x458   :  { %693 = vpow2.f32 %v527_v35 }
 0x460   :  { %v688_v30 = vpop.eup %687 }
 0x461   :  { %v690_v31 = vpop.eup %689  ;;  %560 = vrot.lane.b32.xlu1 %v688_v30, %s888_s9 }
 0x462   :  { %543 = vrot.lane.b32.xlu0 %v690_v31, %s889_s1 }
 0x464   :  { %v692_v32 = vpop.eup %691 }
 0x465   :  { %577 = vrot.lane.b32.xlu1 %v692_v32, %s890_s13  ;;  %v694_v36 = vpop.eup %693 }
 0x466   :  { %v529_v37 = vsel %vm522_vm7, %v694_v36, 0.0 }
 0x481   :  { %530 = vadd.xlane.f32.xlu0 %v529_v37 }
 0x4d3   :  { %v561_v38 = vpop.permute.xlu1 %560 }
 0x4d4   :  { %v544_v39 = vpop.permute.xlu0 %543  ;;  %v563_v40 = vsel %vm522_vm7, %v561_v38, 0.0 }
 0x4d5   :  { %v546_v41 = vsel %vm522_vm7, %v544_v39, 0.0  ;;  %564 = vadd.xlane.f32.xlu0 %v563_v40 }
 0x4d6   :  { %547 = vadd.xlane.f32.xlu1 %v546_v41 }
 0x4d7   :  { %v578_v42 = vpop.permute.xlu1 %577 }
 0x4d8   :  { %v580_v43 = vsel %vm522_vm7, %v578_v42, 0.0 }
 0x4d9   :  { %581 = vadd.xlane.f32.xlu0 %v580_v43 }
 0x4da   :  { %834 = shalt.err (!%p831_p6)
}
 0x4db   :  { %605 = dma.vmem_to_hbm [thread:$0]  %s603_s15, 128, %s1039_s11, [#allocation17]  }
 0x4dc   :  { %s892_s18 = smov [#allocation15]  }
 0x4dd   :  { %s592_s19 = sshll.u32 %s892_s18, 4  ;;  %s593_s19 = int_to_ptr.vmem [resolvable:$true] %s592_s19 }
 0x4de   :  { %s843_s11 = scalar_lea.vmem %s593_s19, 128  ;;  %p848_p8 = scmp.lt.s32.totalorder %s593_s19, %s593_s19 }
 0x4df   :  { %p844_p7 = scmp.ne.s32.totalorder %s593_s19, %s843_s11  ;;  %p849_p9 = scmp.lt.s32.totalorder %s843_s11, %s843_s11 }
 0x4e1   :  { %p850_p10 = por %p849_p9, %p848_p8 }
 0x4e3   :  { %p851_p11 = pnand %p850_p10, %p844_p7 }
 0x50a   :  { %v531_v44 = vpop.xlane.xlu0 %530 }
 0x50b   :  { %695 = vrcp.f32 %v531_v44 }
 0x518   :  { %v696_v45 = vpop.eup %695 }
 0x519   :  { %v533_v46 = vmul.f32 %v696_v45, %v694_v36 }
 0x51b   :  { %534 = vst.msk [vmem:[#allocation15] sm:$0xff] %vm522_vm7, %v533_v46 }
 0x55e   :  { %v565_v47 = vpop.xlane.xlu0 %564 }
 0x55f   :  { %697 = vrcp.f32 %v565_v47  ;;  %v548_v48 = vpop.xlane.xlu1 %547 }
 0x560   :  { %699 = vrcp.f32 %v548_v48 }
 0x562   :  { %v582_v49 = vpop.xlane.xlu0 %581 }
 0x563   :  { %701 = vrcp.f32 %v582_v49 }
 0x56c   :  { %v698_v50 = vpop.eup %697 }
 0x56d   :  { %v700_v51 = vpop.eup %699  ;;  %v567_v52 = vmul.f32 %v698_v50, %v688_v30 }
 0x56e   :  { %v550_v53 = vmul.f32 %v700_v51, %v690_v31 }
 0x570   :  { %v702_v54 = vpop.eup %701  ;;  %551 = vst.msk [vmem:[#allocation15] sm:$0xff] %vm535_vm5, %v550_v53 }
 0x571   :  { %568 = vst.msk [vmem:[#allocation15] sm:$0xff] %vm552_vm4, %v567_v52  ;;  %v584_v55 = vmul.f32 %v702_v54, %v692_v32 }
 0x573   :  { %585 = vst.msk [vmem:[#allocation15] sm:$0xff] %vm569_vm6, %v584_v55 }
 0x574   :  { %854 = shalt.err (!%p851_p11)
}
 0x575   :  { %595 = dma.vmem_to_hbm [thread:$0]  %s593_s19, 128, %s1038_s10, [#allocation6]  }
 0x576   :  { %871 = dma.done.wait [#allocation6], 128  }
 0x577   :  { %872 = vsyncadd [#allocation6], 4294967168 }
 0x578   :  { %873 = dma.done.wait [#allocation17], 128  }
 0x579   :  { %874 = vsyncadd [#allocation17], 4294967168 }
 0x57a   :  { %612 = vsyncpa [#allocation5], 1 }
 0x57b   :  { %613 = vsyncpa [#allocation8], 1 }
 0x57c   :  { %614 = vsyncpa [#allocation11], 1 }
 0x57d   :  { %615 = vsyncpa [#allocation14], 1 }
 0x57e   :  { %616 = vsyncpa [#allocation6], 1 }
 0x57f   :  { %617 = vsyncpa [#allocation17], 1 }

</bundles_post_ra>
